<compile_context>
chip_gen: v7x
topology: tpu7x:2x2x1
jax: 0.10.0
libtpu: 0.0.40
codegen_flags: <defaults>
</compile_context>

<pallas_src>
import functools

import jax
import jax.numpy as jnp
from jax.experimental import pallas as pl
from jax.experimental.pallas import tpu as pltpu


def _convblock_kernel(x_ref, w_ref, b_ref, g_ref, be_ref, o_ref, *,
                      K, stride, W_pad, H_out, W_out, eps, neg_slope):
    # x_ref : (B_blk, C_in, L)          bf16   (zero-padded sample, flattened spatial)
    # w_ref : (K*K, C_out, C_in)        bf16   (tap-major weight)
    # b_ref/g_ref/be_ref: (C_out, 1)    f32
    # o_ref : (B_blk, C_out, Lw)        f32    ("wide" channel-major output)
    B_blk, C_in, L = x_ref.shape
    Lw = o_ref.shape[2]
    P = H_out * W_out
    inv_P = 1.0 / float(P)
    span = stride * (Lw - 1) + 1

    x = x_ref[...]                                   # (B, C_in, L) bf16
    w = w_ref[...]                                   # (K*K, C_out, C_in) bf16
    b = b_ref[...]                                   # (C_out, 1) f32
    g = g_ref[...]
    be = be_ref[...]

    # Per-tap weight slabs (static leading-axis indexing, no lane slicing).
    w_taps = [w[kh * K + kw] for kh in range(K) for kw in range(K)]   # each (C_out, C_in)

    # Valid-column mask over the wide spatial axis: m = oh*W_pad + ow is valid iff ow < W_out.
    col = jax.lax.broadcasted_iota(jnp.int32, (1, Lw), 1)
    valid = (col % W_pad) < W_out                                     # (1, Lw) bool

    for bb in range(B_blk):                           # B_blk is small & static -> unrolled
        acc = jnp.zeros((w.shape[1], Lw), jnp.float32)
        t = 0
        for kh in range(K):
            for kw in range(K):
                base = kh * W_pad + kw
                xs = x[bb, :, base:base + span:stride]                # (C_in, Lw) bf16
                acc = acc + jnp.dot(w_taps[t], xs,
                                    preferred_element_type=jnp.float32)
                t += 1

        y = acc + b                                                   # conv bias (f32)

        # InstanceNorm2d: single-pass biased stats over the valid spatial positions.
        ym = jnp.where(valid, y, 0.0)
        s = jnp.sum(ym, axis=-1, keepdims=True)                       # (C_out, 1)
        sq = jnp.sum(ym * ym, axis=-1, keepdims=True)                 # (C_out, 1)
        mean = s * inv_P
        var = jnp.maximum(sq * inv_P - mean * mean, 0.0)              # biased, clamped
        scale = g * jax.lax.rsqrt(var + eps)                          # gamma / sqrt(var+eps)
        shift = be - mean * scale
        z = y * scale + shift                                         # fused norm + affine

        # LeakyReLU(0.01)
        o_ref[bb] = jnp.where(z >= 0, z, neg_slope * z).astype(o_ref.dtype)


def _pick_block_batch(N, bytes_per_sample, vmem_budget_bytes=8 << 20):
    """Largest divisor of N that keeps >=2 grid steps when N>=2 (feeds both v7x TCs via
    the 'parallel' grid axis) and keeps double-buffered per-step blocks well under the
    VMEM budget (sized against v7x's 64 MiB/TC, not v6e's 128 MiB)."""
    cap = max(1, min(N if N < 2 else N // 2,
                     vmem_budget_bytes // max(1, 2 * bytes_per_sample)))
    for b in range(cap, 0, -1):
        if N % b == 0:
            return b
    return 1


def conv_block_forward(x, weight, bias, gamma, beta, *, kernel_size, stride,
                       padding, eps=1e-5, neg_slope=0.01, block_batch=None):
    """ConvBlock forward. x: NCHW f32; weight: (C_out, C_in, K, K). Returns NCHW f32."""
    N, C_in, H, W = x.shape
    C_out = weight.shape[0]
    K = kernel_size
    H_out = (H + 2 * padding - K) // stride + 1
    W_out = (W + 2 * padding - K) // stride + 1
    H_pad, W_pad = H + 2 * padding, W + 2 * padding
    L = H_pad * W_pad
    Lw = (H_out - 1) * W_pad + W_out          # "wide" flattened spatial length

    # Pad + flatten spatial (contiguous, 1x-sized input stream), cast to bf16 for DMA/MXU.
    xp = jnp.pad(x, ((0, 0), (0, 0), (padding, padding), (padding, padding)))
    xf = xp.reshape(N, C_in, L).astype(jnp.bfloat16)

    # Weight as (K*K, C_out, C_in), taps ordered (kh, kw); bf16.
    w_kk = jnp.transpose(weight, (2, 3, 0, 1)).reshape(K * K, C_out, C_in)
    w_kk = w_kk.astype(jnp.bfloat16)

    b_col = bias.reshape(C_out, 1).astype(jnp.float32)
    g_col = gamma.reshape(C_out, 1).astype(jnp.float32)
    be_col = beta.reshape(C_out, 1).astype(jnp.float32)

    bytes_per_sample = C_in * L * 2 + C_out * Lw * 4
    if block_batch is None:
        block_batch = _pick_block_batch(N, bytes_per_sample)
    assert N % block_batch == 0

    kernel = functools.partial(
        _convblock_kernel, K=K, stride=stride, W_pad=W_pad,
        H_out=H_out, W_out=W_out, eps=eps, neg_slope=neg_slope)

    out_wide = pl.pallas_call(
        kernel,
        out_shape=jax.ShapeDtypeStruct((N, C_out, Lw), jnp.float32),
        grid_spec=pltpu.PrefetchScalarGridSpec(
            num_scalar_prefetch=0,
            grid=(N // block_batch,),
            in_specs=[
                pl.BlockSpec((block_batch, C_in, L), lambda n: (n, 0, 0)),
                pl.BlockSpec((K * K, C_out, C_in), lambda n: (0, 0, 0)),
                pl.BlockSpec((C_out, 1), lambda n: (0, 0)),
                pl.BlockSpec((C_out, 1), lambda n: (0, 0)),
                pl.BlockSpec((C_out, 1), lambda n: (0, 0)),
            ],
            out_specs=pl.BlockSpec((block_batch, C_out, Lw), lambda n: (n, 0, 0)),
        ),
        compiler_params=pltpu.CompilerParams(
            dimension_semantics=("parallel",)),
    )(xf, w_kk, b_col, g_col, be_col)

    # Unpack wide layout -> NCHW: valid columns are m = oh*W_pad + ow with ow < W_out.
    pad_tail = H_out * W_pad - Lw             # = W_pad - W_out
    out = jnp.pad(out_wide, ((0, 0), (0, 0), (0, pad_tail)))
    out = out.reshape(N, C_out, H_out, W_pad)[..., :W_out]
    return out


def _reference_forward(x, weight, bias, gamma, beta, *, kernel_size, stride,
                       padding, eps=1e-5, neg_slope=0.01, conv_dtype=jnp.float32):
    """Plain-JAX reference for validation (conv optionally in bf16, f32 accumulation)."""
    y = jax.lax.conv_general_dilated(
        x.astype(conv_dtype), weight.astype(conv_dtype),
        window_strides=(stride, stride),
        padding=[(padding, padding), (padding, padding)],
        dimension_numbers=("NCHW", "OIHW", "NCHW"),
        preferred_element_type=jnp.float32)
    y = y + bias.reshape(1, -1, 1, 1)
    mean = jnp.mean(y, axis=(2, 3), keepdims=True)
    var = jnp.mean((y - mean) ** 2, axis=(2, 3), keepdims=True)
    y = (y - mean) * jax.lax.rsqrt(var + eps)
    y = y * gamma.reshape(1, -1, 1, 1) + beta.reshape(1, -1, 1, 1)
    return jnp.where(y >= 0, y, neg_slope * y)


if __name__ == "__main__":
    # ConvBlock(in_channels=4, out_channels=8, kernel_size=3, stride=1)
    N, C_in, H, W = 2, 4, 16, 16
    C_out, K, stride = 8, 3, 1
    padding = K // 2

    key = jax.random.PRNGKey(0)
    kx, kw_, kb, kg, kbe = jax.random.split(key, 5)
    x = jax.random.normal(kx, (N, C_in, H, W), dtype=jnp.float32)
    # Deterministic synthetic "init" of parameters (not a checkpoint load).
    weight = jax.random.normal(kw_, (C_out, C_in, K, K), dtype=jnp.float32) * 0.1
    bias = jax.random.normal(kb, (C_out,), dtype=jnp.float32) * 0.1
    gamma = 1.0 + 0.1 * jax.random.normal(kg, (C_out,), dtype=jnp.float32)
    beta = 0.1 * jax.random.normal(kbe, (C_out,), dtype=jnp.float32)

    out = conv_block_forward(x, weight, bias, gamma, beta,
                             kernel_size=K, stride=stride, padding=padding)
    out = jax.block_until_ready(out)
    assert out.shape == (N, C_out, H, W), out.shape

    # Tight check vs. a reference with the same bf16 conv inputs (f32 accumulation).
    ref_bf16 = _reference_forward(x, weight, bias, gamma, beta, kernel_size=K,
                                  stride=stride, padding=padding,
                                  conv_dtype=jnp.bfloat16)
    # Loose check vs. the exact f32 module semantics (bf16 input rounding only).
    ref_f32 = _reference_forward(x, weight, bias, gamma, beta, kernel_size=K,
                                 stride=stride, padding=padding,
                                 conv_dtype=jnp.float32)
    err_tight = float(jnp.abs(out - ref_bf16).max())
    err_loose = float(jnp.abs(out - ref_f32).max())
    assert jnp.allclose(out, ref_bf16, atol=2e-3, rtol=2e-3), err_tight
    assert jnp.allclose(out, ref_f32, atol=5e-2, rtol=5e-2), err_loose

    print("KERNEL_OK")
</pallas_src>

<mosaic_0001>
module attributes {stable_mosaic.version = 11 : i64} {
  func.func @_convblock_kernel(%arg0: i32, %arg1: memref<1x4x324xbf16, #tpu.memory_space<vmem>>, %arg2: memref<9x8x4xbf16, #tpu.memory_space<vmem>>, %arg3: memref<8x1xf32, #tpu.memory_space<vmem>>, %arg4: memref<8x1xf32, #tpu.memory_space<vmem>>, %arg5: memref<8x1xf32, #tpu.memory_space<vmem>>, %arg6: memref<1x8x286xf32, #tpu.memory_space<vmem>>) attributes {dimension_semantics = [#tpu.dimension_semantics<parallel>], iteration_bounds = array<i64: 2>, scalar_prefetch = 0 : i64, scratch_operands = 0 : i64, tpu.core_type = #tpu.core_type<tc>, window_params = [{transform_indices = @transform_0, window_bounds = array<i64: 1, 4, 324>}, {pipeline_mode = #tpu.pipeline_mode<synchronous>, transform_indices = @transform_1, window_bounds = array<i64: 9, 8, 4>}, {pipeline_mode = #tpu.pipeline_mode<synchronous>, transform_indices = @transform_2, window_bounds = array<i64: 8, 1>}, {pipeline_mode = #tpu.pipeline_mode<synchronous>, transform_indices = @transform_3, window_bounds = array<i64: 8, 1>}, {pipeline_mode = #tpu.pipeline_mode<synchronous>, transform_indices = @transform_4, window_bounds = array<i64: 8, 1>}, {transform_indices = @transform_5, window_bounds = array<i64: 1, 8, 286>}]} {
    %c0 = arith.constant 0 : index
    %c0_0 = arith.constant 0 : index
    %c0_1 = arith.constant 0 : index
    %0 = vector.load %arg1[%c0, %c0_0, %c0_1] : memref<1x4x324xbf16, #tpu.memory_space<vmem>>, vector<1x4x324xbf16>
    %c0_2 = arith.constant 0 : index
    %c0_3 = arith.constant 0 : index
    %c0_4 = arith.constant 0 : index
    %1 = vector.load %arg2[%c0_2, %c0_3, %c0_4] : memref<9x8x4xbf16, #tpu.memory_space<vmem>>, vector<9x8x4xbf16>
    %c0_5 = arith.constant 0 : index
    %c0_6 = arith.constant 0 : index
    %2 = vector.load %arg3[%c0_5, %c0_6] : memref<8x1xf32, #tpu.memory_space<vmem>>, vector<8x1xf32>
    %c0_7 = arith.constant 0 : index
    %c0_8 = arith.constant 0 : index
    %3 = vector.load %arg4[%c0_7, %c0_8] : memref<8x1xf32, #tpu.memory_space<vmem>>, vector<8x1xf32>
    %c0_9 = arith.constant 0 : index
    %c0_10 = arith.constant 0 : index
    %4 = vector.load %arg5[%c0_9, %c0_10] : memref<8x1xf32, #tpu.memory_space<vmem>>, vector<8x1xf32>
    %5 = vector.extract_strided_slice %1 {offsets = [0, 0, 0], sizes = [1, 8, 4], strides = [1, 1, 1]} : vector<9x8x4xbf16> to vector<1x8x4xbf16>
    %6 = vector.shape_cast %5 : vector<1x8x4xbf16> to vector<8x4xbf16>
    %7 = vector.extract_strided_slice %1 {offsets = [1, 0, 0], sizes = [1, 8, 4], strides = [1, 1, 1]} : vector<9x8x4xbf16> to vector<1x8x4xbf16>
    %8 = vector.shape_cast %7 : vector<1x8x4xbf16> to vector<8x4xbf16>
    %9 = vector.extract_strided_slice %1 {offsets = [2, 0, 0], sizes = [1, 8, 4], strides = [1, 1, 1]} : vector<9x8x4xbf16> to vector<1x8x4xbf16>
    %10 = vector.shape_cast %9 : vector<1x8x4xbf16> to vector<8x4xbf16>
    %11 = vector.extract_strided_slice %1 {offsets = [3, 0, 0], sizes = [1, 8, 4], strides = [1, 1, 1]} : vector<9x8x4xbf16> to vector<1x8x4xbf16>
    %12 = vector.shape_cast %11 : vector<1x8x4xbf16> to vector<8x4xbf16>
    %13 = vector.extract_strided_slice %1 {offsets = [4, 0, 0], sizes = [1, 8, 4], strides = [1, 1, 1]} : vector<9x8x4xbf16> to vector<1x8x4xbf16>
    %14 = vector.shape_cast %13 : vector<1x8x4xbf16> to vector<8x4xbf16>
    %15 = vector.extract_strided_slice %1 {offsets = [5, 0, 0], sizes = [1, 8, 4], strides = [1, 1, 1]} : vector<9x8x4xbf16> to vector<1x8x4xbf16>
    %16 = vector.shape_cast %15 : vector<1x8x4xbf16> to vector<8x4xbf16>
    %17 = vector.extract_strided_slice %1 {offsets = [6, 0, 0], sizes = [1, 8, 4], strides = [1, 1, 1]} : vector<9x8x4xbf16> to vector<1x8x4xbf16>
    %18 = vector.shape_cast %17 : vector<1x8x4xbf16> to vector<8x4xbf16>
    %19 = vector.extract_strided_slice %1 {offsets = [7, 0, 0], sizes = [1, 8, 4], strides = [1, 1, 1]} : vector<9x8x4xbf16> to vector<1x8x4xbf16>
    %20 = vector.shape_cast %19 : vector<1x8x4xbf16> to vector<8x4xbf16>
    %21 = vector.extract_strided_slice %1 {offsets = [8, 0, 0], sizes = [1, 8, 4], strides = [1, 1, 1]} : vector<9x8x4xbf16> to vector<1x8x4xbf16>
    %22 = vector.shape_cast %21 : vector<1x8x4xbf16> to vector<8x4xbf16>
    %23 = tpu.iota {dimensions = array<i32: 1>} : vector<1x286xi32>
    %c18_i32 = arith.constant 18 : i32
    %c0_i32 = arith.constant 0 : i32
    %24 = arith.cmpi eq, %c18_i32, %c0_i32 : i32
    %c1_i32 = arith.constant 1 : i32
    %25 = arith.select %24, %c1_i32, %c18_i32 : i32
    %26 = vector.broadcast %25 : i32 to vector<1x286xi32>
    %27 = arith.remsi %23, %26 : vector<1x286xi32>
    %c0_i32_11 = arith.constant 0 : i32
    %28 = vector.broadcast %c0_i32_11 : i32 to vector<1x286xi32>
    %29 = arith.cmpi ne, %27, %28 : vector<1x286xi32>
    %c0_i32_12 = arith.constant 0 : i32
    %30 = vector.broadcast %c0_i32_12 : i32 to vector<1x286xi32>
    %31 = arith.cmpi slt, %27, %30 : vector<1x286xi32>
    %c0_i32_13 = arith.constant 0 : i32
    %32 = arith.cmpi slt, %25, %c0_i32_13 : i32
    %33 = vector.broadcast %32 : i1 to vector<1x286xi1>
    %34 = vector.broadcast %33 : vector<1x286xi1> to vector<1x286xi1>
    %35 = arith.xori %31, %34 : vector<1x286xi1>
    %36 = arith.andi %35, %29 : vector<1x286xi1>
    %37 = vector.broadcast %25 : i32 to vector<1x286xi32>
    %38 = arith.addi %27, %37 : vector<1x286xi32>
    %39 = arith.select %36, %38, %27 : vector<1x286xi1>, vector<1x286xi32>
    %c16_i32 = arith.constant 16 : i32
    %40 = vector.broadcast %c16_i32 : i32 to vector<1x286xi32>
    %41 = arith.cmpi slt, %39, %40 : vector<1x286xi32>
    %cst = arith.constant 0.000000e+00 : f32
    %42 = vector.broadcast %cst : f32 to vector<8x286xf32>
    %43 = vector.extract_strided_slice %0 {offsets = [0, 0, 0], sizes = [1, 4, 286], strides = [1, 1, 1]} : vector<1x4x324xbf16> to vector<1x4x286xbf16>
    %44 = vector.shape_cast %43 : vector<1x4x286xbf16> to vector<4x286xbf16>
    %cst_14 = arith.constant dense<0.000000e+00> : vector<8x286xf32>
    %45 = tpu.matmul %6, %44, %cst_14 {dimension_numbers = #tpu.dot_dimension_numbers<[1], [0], [0], [1], [0, 0, 1, 1], [], []>} : vector<8x4xbf16>, vector<4x286xbf16>, vector<8x286xf32> -> vector<8x286xf32>
    %46 = arith.addf %42, %45 : vector<8x286xf32>
    %47 = vector.extract_strided_slice %0 {offsets = [0, 0, 1], sizes = [1, 4, 286], strides = [1, 1, 1]} : vector<1x4x324xbf16> to vector<1x4x286xbf16>
    %48 = vector.shape_cast %47 : vector<1x4x286xbf16> to vector<4x286xbf16>
    %cst_15 = arith.constant dense<0.000000e+00> : vector<8x286xf32>
    %49 = tpu.matmul %8, %48, %cst_15 {dimension_numbers = #tpu.dot_dimension_numbers<[1], [0], [0], [1], [0, 0, 1, 1], [], []>} : vector<8x4xbf16>, vector<4x286xbf16>, vector<8x286xf32> -> vector<8x286xf32>
    %50 = arith.addf %46, %49 : vector<8x286xf32>
    %51 = vector.extract_strided_slice %0 {offsets = [0, 0, 2], sizes = [1, 4, 286], strides = [1, 1, 1]} : vector<1x4x324xbf16> to vector<1x4x286xbf16>
    %52 = vector.shape_cast %51 : vector<1x4x286xbf16> to vector<4x286xbf16>
    %cst_16 = arith.constant dense<0.000000e+00> : vector<8x286xf32>
    %53 = tpu.matmul %10, %52, %cst_16 {dimension_numbers = #tpu.dot_dimension_numbers<[1], [0], [0], [1], [0, 0, 1, 1], [], []>} : vector<8x4xbf16>, vector<4x286xbf16>, vector<8x286xf32> -> vector<8x286xf32>
    %54 = arith.addf %50, %53 : vector<8x286xf32>
    %55 = vector.extract_strided_slice %0 {offsets = [0, 0, 18], sizes = [1, 4, 286], strides = [1, 1, 1]} : vector<1x4x324xbf16> to vector<1x4x286xbf16>
    %56 = vector.shape_cast %55 : vector<1x4x286xbf16> to vector<4x286xbf16>
    %cst_17 = arith.constant dense<0.000000e+00> : vector<8x286xf32>
    %57 = tpu.matmul %12, %56, %cst_17 {dimension_numbers = #tpu.dot_dimension_numbers<[1], [0], [0], [1], [0, 0, 1, 1], [], []>} : vector<8x4xbf16>, vector<4x286xbf16>, vector<8x286xf32> -> vector<8x286xf32>
    %58 = arith.addf %54, %57 : vector<8x286xf32>
    %59 = vector.extract_strided_slice %0 {offsets = [0, 0, 19], sizes = [1, 4, 286], strides = [1, 1, 1]} : vector<1x4x324xbf16> to vector<1x4x286xbf16>
    %60 = vector.shape_cast %59 : vector<1x4x286xbf16> to vector<4x286xbf16>
    %cst_18 = arith.constant dense<0.000000e+00> : vector<8x286xf32>
    %61 = tpu.matmul %14, %60, %cst_18 {dimension_numbers = #tpu.dot_dimension_numbers<[1], [0], [0], [1], [0, 0, 1, 1], [], []>} : vector<8x4xbf16>, vector<4x286xbf16>, vector<8x286xf32> -> vector<8x286xf32>
    %62 = arith.addf %58, %61 : vector<8x286xf32>
    %63 = vector.extract_strided_slice %0 {offsets = [0, 0, 20], sizes = [1, 4, 286], strides = [1, 1, 1]} : vector<1x4x324xbf16> to vector<1x4x286xbf16>
    %64 = vector.shape_cast %63 : vector<1x4x286xbf16> to vector<4x286xbf16>
    %cst_19 = arith.constant dense<0.000000e+00> : vector<8x286xf32>
    %65 = tpu.matmul %16, %64, %cst_19 {dimension_numbers = #tpu.dot_dimension_numbers<[1], [0], [0], [1], [0, 0, 1, 1], [], []>} : vector<8x4xbf16>, vector<4x286xbf16>, vector<8x286xf32> -> vector<8x286xf32>
    %66 = arith.addf %62, %65 : vector<8x286xf32>
    %67 = vector.extract_strided_slice %0 {offsets = [0, 0, 36], sizes = [1, 4, 286], strides = [1, 1, 1]} : vector<1x4x324xbf16> to vector<1x4x286xbf16>
    %68 = vector.shape_cast %67 : vector<1x4x286xbf16> to vector<4x286xbf16>
    %cst_20 = arith.constant dense<0.000000e+00> : vector<8x286xf32>
    %69 = tpu.matmul %18, %68, %cst_20 {dimension_numbers = #tpu.dot_dimension_numbers<[1], [0], [0], [1], [0, 0, 1, 1], [], []>} : vector<8x4xbf16>, vector<4x286xbf16>, vector<8x286xf32> -> vector<8x286xf32>
    %70 = arith.addf %66, %69 : vector<8x286xf32>
    %71 = vector.extract_strided_slice %0 {offsets = [0, 0, 37], sizes = [1, 4, 286], strides = [1, 1, 1]} : vector<1x4x324xbf16> to vector<1x4x286xbf16>
    %72 = vector.shape_cast %71 : vector<1x4x286xbf16> to vector<4x286xbf16>
    %cst_21 = arith.constant dense<0.000000e+00> : vector<8x286xf32>
    %73 = tpu.matmul %20, %72, %cst_21 {dimension_numbers = #tpu.dot_dimension_numbers<[1], [0], [0], [1], [0, 0, 1, 1], [], []>} : vector<8x4xbf16>, vector<4x286xbf16>, vector<8x286xf32> -> vector<8x286xf32>
    %74 = arith.addf %70, %73 : vector<8x286xf32>
    %75 = vector.extract_strided_slice %0 {offsets = [0, 0, 38], sizes = [1, 4, 286], strides = [1, 1, 1]} : vector<1x4x324xbf16> to vector<1x4x286xbf16>
    %76 = vector.shape_cast %75 : vector<1x4x286xbf16> to vector<4x286xbf16>
    %cst_22 = arith.constant dense<0.000000e+00> : vector<8x286xf32>
    %77 = tpu.matmul %22, %76, %cst_22 {dimension_numbers = #tpu.dot_dimension_numbers<[1], [0], [0], [1], [0, 0, 1, 1], [], []>} : vector<8x4xbf16>, vector<4x286xbf16>, vector<8x286xf32> -> vector<8x286xf32>
    %78 = arith.addf %74, %77 : vector<8x286xf32>
    %79 = vector.broadcast %2 : vector<8x1xf32> to vector<8x286xf32>
    %80 = arith.addf %78, %79 : vector<8x286xf32>
    %cst_23 = arith.constant 0.000000e+00 : f32
    %81 = vector.shape_cast %41 : vector<1x286xi1> to vector<1x286xi1>
    %82 = vector.broadcast %81 : vector<1x286xi1> to vector<8x286xi1>
    %83 = vector.broadcast %cst_23 : f32 to vector<8x286xf32>
    %84 = arith.select %82, %80, %83 : vector<8x286xi1>, vector<8x286xf32>
    %cst_24 = arith.constant dense<0.000000e+00> : vector<8xf32>
    %85 = vector.multi_reduction <add>, %84, %cst_24 [1] : vector<8x286xf32> to vector<8xf32>
    %86 = vector.shape_cast %85 : vector<8xf32> to vector<8x1xf32>
    %87 = arith.mulf %84, %84 : vector<8x286xf32>
    %cst_25 = arith.constant dense<0.000000e+00> : vector<8xf32>
    %88 = vector.multi_reduction <add>, %87, %cst_25 [1] : vector<8x286xf32> to vector<8xf32>
    %89 = vector.shape_cast %88 : vector<8xf32> to vector<8x1xf32>
    %cst_26 = arith.constant 3.906250e-03 : f32
    %90 = vector.broadcast %cst_26 : f32 to vector<8x1xf32>
    %91 = arith.mulf %86, %90 : vector<8x1xf32>
    %cst_27 = arith.constant 3.906250e-03 : f32
    %92 = vector.broadcast %cst_27 : f32 to vector<8x1xf32>
    %93 = arith.mulf %89, %92 : vector<8x1xf32>
    %94 = arith.mulf %91, %91 : vector<8x1xf32>
    %95 = arith.subf %93, %94 : vector<8x1xf32>
    %cst_28 = arith.constant 0.000000e+00 : f32
    %96 = vector.broadcast %cst_28 : f32 to vector<8x1xf32>
    %97 = arith.maximumf %95, %96 : vector<8x1xf32>
    %cst_29 = arith.constant 9.99999974E-6 : f32
    %98 = vector.broadcast %cst_29 : f32 to vector<8x1xf32>
    %99 = arith.addf %97, %98 : vector<8x1xf32>
    %100 = math.rsqrt %99 : vector<8x1xf32>
    %101 = arith.mulf %3, %100 : vector<8x1xf32>
    %102 = arith.mulf %91, %101 : vector<8x1xf32>
    %103 = arith.subf %4, %102 : vector<8x1xf32>
    %104 = vector.broadcast %101 : vector<8x1xf32> to vector<8x286xf32>
    %105 = arith.mulf %80, %104 : vector<8x286xf32>
    %106 = vector.broadcast %103 : vector<8x1xf32> to vector<8x286xf32>
    %107 = arith.addf %105, %106 : vector<8x286xf32>
    %cst_30 = arith.constant 0.000000e+00 : f32
    %108 = vector.broadcast %cst_30 : f32 to vector<8x286xf32>
    %109 = arith.cmpf oge, %107, %108 : vector<8x286xf32>
    %cst_31 = arith.constant 0.00999999977 : f32
    %110 = vector.broadcast %cst_31 : f32 to vector<8x286xf32>
    %111 = arith.mulf %110, %107 : vector<8x286xf32>
    %112 = arith.select %109, %107, %111 : vector<8x286xi1>, vector<8x286xf32>
    %c0_32 = arith.constant 0 : index
    %c0_33 = arith.constant 0 : index
    %c0_34 = arith.constant 0 : index
    %113 = vector.load %arg6[%c0_32, %c0_33, %c0_34] : memref<1x8x286xf32, #tpu.memory_space<vmem>>, vector<1x8x286xf32>
    %114 = vector.shape_cast %113 : vector<1x8x286xf32> to vector<8x286xf32>
    %115 = vector.shape_cast %112 : vector<8x286xf32> to vector<1x8x286xf32>
    tpu.vector_store %arg6[%c0_32, %c0_33, %c0_34], %115 {strides = array<i32>} : memref<1x8x286xf32, #tpu.memory_space<vmem>>, vector<1x8x286xf32>,
    return
  }
  func.func @transform_0(%arg0: i32) -> (i32, i32, i32) {
    %c0_i32 = arith.constant 0 : i32
    %c0_i32_0 = arith.constant 0 : i32
    %c0_i32_1 = arith.constant 0 : i32
    return %arg0, %c0_i32, %c0_i32_0 : i32, i32, i32
  }
  func.func @transform_1(%arg0: i32) -> (i32, i32, i32) {
    %c0_i32 = arith.constant 0 : i32
    %c0_i32_0 = arith.constant 0 : i32
    %c0_i32_1 = arith.constant 0 : i32
    %c0_i32_2 = arith.constant 0 : i32
    return %c0_i32, %c0_i32_0, %c0_i32_1 : i32, i32, i32
  }
  func.func @transform_2(%arg0: i32) -> (i32, i32) {
    %c0_i32 = arith.constant 0 : i32
    %c0_i32_0 = arith.constant 0 : i32
    %c0_i32_1 = arith.constant 0 : i32
    return %c0_i32, %c0_i32_0 : i32, i32
  }
  func.func @transform_3(%arg0: i32) -> (i32, i32) {
    %c0_i32 = arith.constant 0 : i32
    %c0_i32_0 = arith.constant 0 : i32
    %c0_i32_1 = arith.constant 0 : i32
    return %c0_i32, %c0_i32_0 : i32, i32
  }
  func.func @transform_4(%arg0: i32) -> (i32, i32) {
    %c0_i32 = arith.constant 0 : i32
    %c0_i32_0 = arith.constant 0 : i32
    %c0_i32_1 = arith.constant 0 : i32
    return %c0_i32, %c0_i32_0 : i32, i32
  }
  func.func @transform_5(%arg0: i32) -> (i32, i32, i32) {
    %c0_i32 = arith.constant 0 : i32
    %c0_i32_0 = arith.constant 0 : i32
    %c0_i32_1 = arith.constant 0 : i32
    return %arg0, %c0_i32, %c0_i32_0 : i32, i32, i32
  }
}

</mosaic_0001>

<bundles_post_ra>
// kernel: tpu_custom_call.1
= control target key start
LH: loop header
LB: loop body
LE: loop exit
PB: predicated region body
PF: predicated region fallthrough
CT: control target
= control target key end

     0   :  { %10 = vsyncpa [#allocation3], 0  ;;  %s1919_s0 = inlined_call_operand.vmem [shape: bf16[2,4,324], index: 0, kind: input, shape index: {}]   ;;  %s1920_s1 = inlined_call_operand.vmem [shape: bf16[9,8,4], index: 1, kind: input, shape index: {}]   ;;  %s1921_s2 = inlined_call_operand.vmem [shape: f32[8,1], index: 2, kind: input, shape index: {}]   ;;  %s1922_s3 = inlined_call_operand.vmem [shape: f32[8,1], index: 3, kind: input, shape index: {}]   ;;  %s1923_s4 = inlined_call_operand.vmem [shape: f32[8,1], index: 4, kind: input, shape index: {}]   ;;  %s1924_s5 = inlined_call_operand.hbm [shape: f32[2,8,286], index: 5, kind: output, shape index: {}]  }
   0x1   :  { %12 = vsyncpa [#allocation3 + $0x1], 0  ;;  %s1663_s18 = smov 0   ;;  %s1665_s19 = smov 0  }
   0x2   :  { %s1667_s20 = smov 0   ;;  %s1669_s21 = smov 0  }
   0x3 LB: > { %s1684_s22 = sadd.s32 4294967295, %s1618_s21   ;;  %s1384_s23 = sadd.s32 4294967294, %s1618_s21   ;;  %s1618_s21 = sphi %s1669_s21, %s1936_s21   ;;  %s1614_s20 = sphi %s1667_s20, %s1935_s20   ;;  %s1610_s19 = sphi %s1665_s19, %s1934_s19   ;;  %s1606_s18 = sphi %s1663_s18, %s1933_s18  }
   0x4   : > { %s1688_s24 = sadd.s32 1, %s1618_s21   ;;  %s135_s25 = sadd.s32 1, %s1614_s20 }
   0x5   : > { %s132_s26 = ssub.s32 %s1618_s21, %s1688_s24  ;;  %p145_p0 = scmp.ne.s32.totalorder %s1614_s20, %s1610_s19 }
   0x6   : > { %p133_p1 = scmp.eq.s32.totalorder %s132_s26, 0  ;;  %p146_p2 = scmp.eq.s32.totalorder %s1684_s22, 1 }
   0x7   : > { %p151_p3 = scmp.ne.s32.totalorder %s1610_s19, %s1606_s18  ;;  %p152_p4 = scmp.eq.s32.totalorder %s1384_s23, 1 }
   0x8   : > { %s1699_s27 = scalar_select %p133_p1, %s1614_s20, %s135_s25  }
   0x9   : > { %p1701_p5 = por %p146_p2, %p145_p0  ;;  %p1705_p6 = por %p152_p4, %p151_p3 }
   0xa   : > { %p1387_p7 = scmp.ge.s32.totalorder %s1618_s21, 1  ;;  %p190_p8 = scmp.lt.s32.totalorder %s1618_s21, 3 }
   0xc   : > { %p191_p9 = pnand %p1387_p7, %p190_p8 }
   0xd   : > { %p218_p10 = scmp.lt.s32.totalorder (!%p191_p9), %s1684_s22, 1  ;;  %v237_v0 = vlaneseq (!%p191_p9)  ;;  %v1620_v1 = vmov (!%p191_p9), 1983009808   ;;  %v1621_v3 = vmov (!%p191_p9), 0.0   ;;  %vm1622_vm0 = vmmov (!%p191_p9), 0   ;;  %s1624_s10 = smov (!%p191_p9), 127  }
   0xe   : > { %194 = sbr.rel (%p191_p9) target bundleno = 756 (0x2f4), region = 40  ;;  %v295_v2 = vunpack.c.l.s4 (!%p191_p9), %v1620_v1  ;;  %1437 = vmatprep.subr.bf16.mxu1 (!%p191_p9), %v1621_v3  ;;  %1439 = vmatprep.mubr.msk.bf16.mxu1 (!%p191_p9), %vm1622_vm0, %v1621_v3  ;;  %v1623_v6 = vmov (!%p191_p9), 0   ;;  %s1625_s11 = smov (!%p191_p9), 126   ;;  %v234_v13 = vld [vmem:[%s1921_s2] sm:$0xff] (!%p191_p9)  ;;  %vm322_vm1 = vcmask (!%p191_p9), 1041408   ;;  %vm315_vm2 = vcmask (!%p191_p9), 1039360  }
   0xf   : > { %v298_v4 = vshrl.u32 (!%p191_p9), %v237_v0, 7  ;;  %364 = vmatprep.mubr.bf16.mxu0 (!%p191_p9), %v1623_v6  ;;  %1551 = vset.pattern.permute.xlu0 (!%p191_p9), %v1623_v6  ;;  %s1626_s12 = smov (!%p191_p9), 110   ;;  %s1627_s13 = smov (!%p191_p9), 109   ;;  %v226_v18 = vld [vmem:[%s1920_s1 + $0x4] sm:$0xf] (!%p191_p9)  ;;  %vm318_vm3 = vcmask (!%p191_p9), 31744  }
  0x10   : > { %v296_v5 = vunpack.c.0.s8 (!%p191_p9), %v295_v2  ;;  %1552 = vset.pattern.permute.xlu1 (!%p191_p9), %v1623_v6  ;;  %s1628_s14 = smov (!%p191_p9), 108   ;;  %s1629_s15 = smov (!%p191_p9), 92   ;;  %vm512_vm4 = vcmask (!%p191_p9), 1031168   ;;  %v225_v28 = vld [vmem:[%s1920_s1] sm:$0xf] (!%p191_p9)  ;;  %vm617_vm5 = vcmask (!%p191_p9), 900096  }
  0x11   : > { %s1630_s16 = smov (!%p191_p9), 91   ;;  %s1631_s17 = smov (!%p191_p9), 90   ;;  %v227_v37 = vld [vmem:[%s1920_s1 + $0x8] sm:$0xf] (!%p191_p9)  ;;  %vm722_vm6 = vcmask (!%p191_p9), 891904   ;;  %vm827_vm7 = vcmask (!%p191_p9), 883712  }
  0x12   : > { %v299_v7 = vsub.s32 (!%p191_p9), %v296_v5, %v298_v4  ;;  %v228_v46 = vld [vmem:[%s1920_s1 + $0xc] sm:$0xf] (!%p191_p9)  ;;  %v229_v54 = vld [vmem:[%s1920_s1 + $0x10] sm:$0xf] (!%p191_p9)  ;;  %vm932_vm8 = vcmask (!%p191_p9), 752640   ;;  %vm1037_vm9 = vcmask (!%p191_p9), 744448  }
  0x13   : > { %v230_v62 = vld [vmem:[%s1920_s1 + $0x14] sm:$0xf] (!%p191_p9)  ;;  %vm1142_vm10 = vcmask (!%p191_p9), 736256   ;;  %s1632_s25 = smov (!%p191_p9), [#allocation2]  }
  0x14   : > { %s1560_s26 = sshll.u32 (!%p191_p9), %s1632_s25, 4  ;;  %s1561_s26 = int_to_ptr.vmem [resolvable:$false] %s1560_s26 }
  0x15   : > { %s219_s30 = scalar_select %p218_p10, %s1684_s22, 1 }
  0x17   : > { %s1492_s6 = smul.u32 6, %s219_s30  ;;  %s1562_s30 = scalar_lea.vmem %s1561_s26, 768 }
  0x19   : > { %s222_s9 = scalar_lea.vmem %s1919_s0, %s1492_s6 }
  0x1a   : > { %v224_v8 = vld [vmem:[%s222_s9] sm:$0x3f] }
  0x1b   : > { %v300_v9 = vrot.slane %v224_v8, %v299_v7  ;;  %v293_v10 = vcombine.high %v224_v8, %v224_v8  ;;  %v231_v8 = vld [vmem:[%s1920_s1 + $0x18] sm:$0xf] }
  0x1d   : > { %309 = vrot.lane.b32.xlu0 %v300_v9, %s1624_s10  ;;  %v307_v11 = vrot.slane %v293_v10, %v299_v7  ;;  %v308_v12 = vcombine.high %v300_v9, %v300_v9  ;;  %v417_v24 = vsel %vm322_vm1, %v300_v9, 0 }
  0x1f   : > { %313 = vrot.lane.b32.xlu1 %v307_v11, %s1624_s10  ;;  %v423_v21 = vsel %vm322_vm1, %v307_v11, 0 }
  0x21   : > { %311 = vrot.lane.b32.xlu0 %v308_v12, %s1624_s10  ;;  %s215_s10 = sand.u32 1, %s1610_s19  }
  0x23   : > { %506 = vrot.lane.b32.xlu1 %v300_v9, %s1625_s11 }
  0x25   : > { %508 = vrot.lane.b32.xlu0 %v308_v12, %s1625_s11 }
  0x27   : > { %510 = vrot.lane.b32.xlu1 %v307_v11, %s1625_s11  ;;  %s1491_s11 = smul.u32 24, %s215_s10 }
  0x29   : > { %611 = vrot.lane.b32.xlu0 %v300_v9, %s1626_s12 }
  0x2b   : > { %613 = vrot.lane.b32.xlu1 %v308_v12, %s1626_s12 }
  0x2d   : > { %615 = vrot.lane.b32.xlu0 %v307_v11, %s1626_s12  ;;  %s1499_s12 = smul.u32 384, %s1684_s22  ;;  %s1311_s22 = scalar_lea.sflag [#allocation3], %s215_s10 }
  0x2f   : > { %716 = vrot.lane.b32.xlu1 %v300_v9, %s1627_s13 }
  0x31   : > { %718 = vrot.lane.b32.xlu0 %v308_v12, %s1627_s13 }
  0x33   : > { %720 = vrot.lane.b32.xlu1 %v307_v11, %s1627_s13  ;;  %s217_s13 = scalar_lea.vmem [#allocation2], %s1491_s11 }
  0x35   : > { %821 = vrot.lane.b32.xlu0 %v300_v9, %s1628_s14 }
  0x37   : > { %823 = vrot.lane.b32.xlu1 %v308_v12, %s1628_s14 }
  0x39   : > { %825 = vrot.lane.b32.xlu0 %v307_v11, %s1628_s14  ;;  %s1325_s14 = sshll.u32 %s217_s13, 4  ;;  %s1878_s14 = int_to_ptr.vmem [resolvable:$true] %s1325_s14 }
  0x3a   : > { %s1556_s23 = scalar_lea.vmem %s1878_s14, 384  ;;  %p1563_p0 = scmp.lt.s32.totalorder %s1878_s14, %s1561_s26 }
  0x3b   : > { %926 = vrot.lane.b32.xlu1 %v300_v9, %s1629_s15  ;;  %p1557_p11 = scmp.ne.s32.totalorder %s1878_s14, %s1556_s23  ;;  %p1564_p1 = scmp.lt.s32.totalorder %s1562_s30, %s1556_s23 }
  0x3d   : > { %928 = vrot.lane.b32.xlu0 %v308_v12, %s1629_s15  ;;  %p1558_p12 = pnand %p1557_p11, %p1701_p5  ;;  %p1565_p2 = por %p1564_p1, %p1563_p0 }
  0x3f   : > { %930 = vrot.lane.b32.xlu1 %v307_v11, %s1629_s15  ;;  %p1559_p13 = pneg %p1558_p12 }
  0x41   : > { %1031 = vrot.lane.b32.xlu0 %v300_v9, %s1630_s16  ;;  %p1566_p3 = pnand %p1565_p2, %p1559_p13 }
  0x43   : > { %1033 = vrot.lane.b32.xlu1 %v308_v12, %s1630_s16 }
  0x45   : > { %1035 = vrot.lane.b32.xlu0 %v307_v11, %s1630_s16 }
  0x47   : > { %1136 = vrot.lane.b32.xlu1 %v300_v9, %s1631_s17 }
  0x49   : > { %1138 = vrot.lane.b32.xlu0 %v308_v12, %s1631_s17 }
  0x4b   : > { %1140 = vrot.lane.b32.xlu1 %v307_v11, %s1631_s17  ;;  %s1876_s17 = scalar_lea.hbm %s1924_s5, %s1499_s12 }
  0x4d   : > { %1243 = vperm.xlu0 %1551, %v234_v13  }
  0x8f   : > { %v310_v14 = vpop.permute.xlu0 %309 }
  0x91   : > { %v314_v15 = vpop.permute.xlu1 %313 }
  0x92   : > { %v330_v16 = vsel %vm322_vm1, %v314_v15, 0 }
  0x93   : > { %v312_v17 = vpop.permute.xlu0 %311  ;;  %1438 = vmatpush3.bf16.msra.mxu1 %v330_v16 }
  0x94   : > { %v317_v19 = vsel %vm315_vm2, %v312_v17, %v314_v15  ;;  %v316_v20 = vsel %vm315_vm2, %v310_v14, %v312_v17  ;;  %1443 = vmatprep.subr.bf16.mxu1 %v1621_v3  ;;  %v232_v15 = vld [vmem:[%s1920_s1 + $0x1c] sm:$0xf] }
  0x95   : > { %1389 = vmatprep.subr.msk.bf16.mxu0 %vm322_vm1, %v317_v19  ;;  %v324_v22 = vsel %vm322_vm1, %v316_v20, 0  ;;  %v507_v23 = vpop.permute.xlu1 %506  ;;  %v233_v19 = vld [vmem:[%s1920_s1 + $0x20] sm:$0xf] }
  0x96   : > { %333 = vmatpush1.bf16.msra.mxu0 %v324_v22  ;;  %1440 = vmatmul.mubr.msk.bf16.vlgmr.msra.gmra.mrb[0].mxu1 %vm318_vm3, %v226_v18 }
  0x97   : > { %1392 = vmatprep.subr.msk.bf16.mxu0 %vm322_vm1, %v308_v12  ;;  %v509_v25 = vpop.permute.xlu0 %508  ;;  %1444 = vmatpush3.bf16.msra.mxu1 %v423_v21 }
  0x98   : > { %1445 = vmatprep.mubr.msk.bf16.mxu1 %vm1622_vm0, %v1621_v3  ;;  %1449 = vmatprep.subr.bf16.mxu1 %v1621_v3  ;;  %v513_v30 = vsel %vm512_vm4, %v507_v23, %v509_v25 }
  0x99   : > { %1390 = vmatmul.mubr.msk.bf16.vlgmr.msra.gmra.mrb[0].mxu0 %vm318_vm3, %v226_v18  ;;  %v511_v26 = vpop.permute.xlu1 %510  ;;  %v519_v33 = vsel %vm322_vm1, %v513_v30, 0 }
  0x9a   : > { %426 = vmatpush1.bf16.msra.mxu0 %v417_v24  ;;  %v514_v27 = vsel %vm512_vm4, %v509_v25, %v511_v26  ;;  %457 = vmatprep.mubr.bf16.mxu0 %v1623_v6  ;;  %v525_v31 = vsel %vm322_vm1, %v511_v26, 0 }
  0x9b   : > { %1395 = vmatprep.subr.msk.bf16.mxu0 %vm322_vm1, %v514_v27  ;;  %v612_v29 = vpop.permute.xlu0 %611 }
  0x9d   : > { %v614_v32 = vpop.permute.xlu1 %613 }
  0x9e   : > { %1446 = vmatmul.mubr.msk.bf16.vlgmr.msra.gmra.mrb[4].mxu1 %vm318_vm3, %v225_v28  ;;  %v618_v39 = vsel %vm617_vm5, %v612_v29, %v614_v32 }
  0x9f   : > { %1450 = vmatpush3.bf16.msra.mxu1 %v525_v31  ;;  %1451 = vmatprep.mubr.msk.bf16.mxu1 %vm1622_vm0, %v1621_v3  ;;  %v616_v34 = vpop.permute.xlu0 %615  ;;  %v624_v42 = vsel %vm322_vm1, %v618_v39, 0 }
  0xa0   : > { %v619_v35 = vsel %vm617_vm5, %v614_v32, %v616_v34  ;;  %1455 = vmatprep.subr.bf16.mxu1 %v1621_v3  ;;  %v630_v40 = vsel %vm322_vm1, %v616_v34, 0 }
  0xa1   : > { %1393 = vmatmul.mubr.msk.bf16.vlgmr.msra.gmra.mrb[4].mxu0 %vm318_vm3, %v225_v28  ;;  %v717_v36 = vpop.permute.xlu1 %716 }
  0xa2   : > { %528 = vmatpush1.bf16.msra.mxu0 %v519_v33  ;;  %559 = vmatprep.mubr.bf16.mxu0 %v1623_v6 }
  0xa3   : > { %1398 = vmatprep.subr.msk.bf16.mxu0 %vm322_vm1, %v619_v35  ;;  %v719_v38 = vpop.permute.xlu0 %718 }
  0xa4   : > { %v723_v47 = vsel %vm722_vm6, %v717_v36, %v719_v38 }
  0xa5   : > { %v721_v41 = vpop.permute.xlu1 %720  ;;  %v729_v50 = vsel %vm322_vm1, %v723_v47, 0 }
  0xa6   : > { %1452 = vmatmul.mubr.msk.bf16.vlgmr.msra.gmra.mrb[8].mxu1 %vm318_vm3, %v227_v37  ;;  %v724_v44 = vsel %vm722_vm6, %v719_v38, %v721_v41  ;;  %v735_v48 = vsel %vm322_vm1, %v721_v41, 0 }
  0xa7   : > { %1456 = vmatpush3.bf16.msra.mxu1 %v630_v40  ;;  %1457 = vmatprep.mubr.msk.bf16.mxu1 %vm1622_vm0, %v1621_v3  ;;  %v822_v43 = vpop.permute.xlu0 %821 }
  0xa8   : > { %1461 = vmatprep.subr.bf16.mxu1 %v1621_v3 }
  0xa9   : > { %1396 = vmatmul.mubr.msk.bf16.vlgmr.msra.gmra.mrb[8].mxu0 %vm318_vm3, %v227_v37  ;;  %v824_v45 = vpop.permute.xlu1 %823 }
  0xaa   : > { %633 = vmatpush1.bf16.msra.mxu0 %v624_v42  ;;  %664 = vmatprep.mubr.bf16.mxu0 %v1623_v6  ;;  %v828_v55 = vsel %vm827_vm7, %v822_v43, %v824_v45 }
  0xab   : > { %1401 = vmatprep.subr.msk.bf16.mxu0 %vm322_vm1, %v724_v44  ;;  %v826_v49 = vpop.permute.xlu0 %825  ;;  %v834_v58 = vsel %vm322_vm1, %v828_v55, 0 }
  0xac   : > { %v829_v52 = vsel %vm827_vm7, %v824_v45, %v826_v49  ;;  %v840_v56 = vsel %vm322_vm1, %v826_v49, 0  ;;  %vm1259_vm7 = vcmask 244736  }
  0xad   : > { %v927_v51 = vpop.permute.xlu1 %926 }
  0xae   : > { %1458 = vmatmul.mubr.msk.bf16.vlgmr.msra.gmra.mrb[12].mxu1 %vm318_vm3, %v228_v46 }
  0xaf   : > { %1462 = vmatpush3.bf16.msra.mxu1 %v735_v48  ;;  %1463 = vmatprep.mubr.msk.bf16.mxu1 %vm1622_vm0, %v1621_v3  ;;  %v929_v53 = vpop.permute.xlu0 %928 }
  0xb0   : > { %1467 = vmatprep.subr.bf16.mxu1 %v1621_v3  ;;  %v933_v63 = vsel %vm932_vm8, %v927_v51, %v929_v53 }
  0xb1   : > { %1399 = vmatmul.mubr.msk.bf16.vlgmr.msra.gmra.mrb[12].mxu0 %vm318_vm3, %v228_v46  ;;  %v931_v57 = vpop.permute.xlu1 %930  ;;  %v939_v4 = vsel %vm322_vm1, %v933_v63, 0 }
  0xb2   : > { %738 = vmatpush1.bf16.msra.mxu0 %v729_v50  ;;  %769 = vmatprep.mubr.bf16.mxu0 %v1623_v6  ;;  %v934_v60 = vsel %vm932_vm8, %v929_v53, %v931_v57  ;;  %v945_v1 = vsel %vm322_vm1, %v931_v57, 0 }
  0xb3   : > { %1404 = vmatprep.subr.msk.bf16.mxu0 %vm322_vm1, %v829_v52  ;;  %v1032_v59 = vpop.permute.xlu0 %1031 }
  0xb5   : > { %v1034_v61 = vpop.permute.xlu1 %1033 }
  0xb6   : > { %1464 = vmatmul.mubr.msk.bf16.vlgmr.msra.gmra.mrb[16].mxu1 %vm318_vm3, %v229_v54  ;;  %v1038_v9 = vsel %vm1037_vm9, %v1032_v59, %v1034_v61  ;;  %v238_v59 = vand.u32 127, %v237_v0 }
  0xb7   : > { %1468 = vmatpush3.bf16.msra.mxu1 %v840_v56  ;;  %1469 = vmatprep.mubr.msk.bf16.mxu1 %vm1622_vm0, %v1621_v3  ;;  %v1036_v2 = vpop.permute.xlu0 %1035  ;;  %v1044_v13 = vsel %vm322_vm1, %v1038_v9, 0 }
  0xb8   : > { %1473 = vmatprep.subr.bf16.mxu1 %v1621_v3  ;;  %v1039_v7 = vsel %vm1037_vm9, %v1034_v61, %v1036_v2  ;;  %v1050_v10 = vsel %vm322_vm1, %v1036_v2, 0 }
  0xb9   : > { %1402 = vmatmul.mubr.msk.bf16.vlgmr.msra.gmra.mrb[16].mxu0 %vm318_vm3, %v229_v54  ;;  %v1137_v5 = vpop.permute.xlu1 %1136 }
  0xba   : > { %843 = vmatpush1.bf16.msra.mxu0 %v834_v58  ;;  %874 = vmatprep.mubr.bf16.mxu0 %v1623_v6 }
  0xbb   : > { %1407 = vmatprep.subr.msk.bf16.mxu0 %vm322_vm1, %v934_v60  ;;  %v1139_v11 = vpop.permute.xlu0 %1138 }
  0xbc   : > { %v1143_v16 = vsel %vm1142_vm10, %v1137_v5, %v1139_v11 }
  0xbd   : > { %v1141_v12 = vpop.permute.xlu1 %1140  ;;  %v1149_v18 = vsel %vm322_vm1, %v1143_v16, 0 }
  0xbe   : > { %1470 = vmatmul.mubr.msk.bf16.vlgmr.msra.gmra.mrb[20].mxu1 %vm318_vm3, %v230_v62  ;;  %v1144_v14 = vsel %vm1142_vm10, %v1139_v11, %v1141_v12  ;;  %v1155_v17 = vsel %vm322_vm1, %v1141_v12, 0 }
  0xbf   : > { %1474 = vmatpush3.bf16.msra.mxu1 %v945_v1  ;;  %1475 = vmatprep.mubr.msk.bf16.mxu1 %vm1622_vm0, %v1621_v3  ;;  %v240_v1 = vadd.s32 256, %v238_v59 }
  0xc0   : > { %1479 = vmatprep.subr.bf16.mxu1 %v1621_v3 }
  0xc1   : > { %1405 = vmatmul.mubr.msk.bf16.vlgmr.msra.gmra.mrb[20].mxu0 %vm318_vm3, %v230_v62 }
  0xc2   : > { %948 = vmatpush1.bf16.msra.mxu0 %v939_v4  ;;  %979 = vmatprep.mubr.bf16.mxu0 %v1623_v6 }
  0xc3   : > { %1410 = vmatprep.subr.msk.bf16.mxu0 %vm322_vm1, %v1039_v7 }
  0xc6   : > { %1476 = vmatmul.mubr.msk.bf16.vlgmr.msra.gmra.mrb[24].mxu1 %vm318_vm3, %v231_v8 }
  0xc7   : > { %1480 = vmatpush3.bf16.msra.mxu1 %v1050_v10  ;;  %1481 = vmatprep.mubr.msk.bf16.mxu1 %vm1622_vm0, %v1621_v3  ;;  %v239_v10 = vadd.s32 128, %v238_v59 }
  0xc8   : > { %1485 = vmatprep.subr.bf16.mxu1 %v1621_v3 }
  0xc9   : > { %1408 = vmatmul.mubr.msk.bf16.vlgmr.msra.gmra.mrb[24].mxu0 %vm318_vm3, %v231_v8 }
  0xca   : > { %1053 = vmatpush1.bf16.msra.mxu0 %v1044_v13  ;;  %1084 = vmatprep.mubr.bf16.mxu0 %v1623_v6  ;;  %v1833_v12 = vmul.u32.u64.low 3817748708, %v240_v1  ;;  %v1834_v13 = vmul.u32.u64.high 3817748708, %v240_v1, %v1833_v12 }
  0xcb   : > { %1413 = vmatprep.subr.msk.bf16.mxu0 %vm322_vm1, %v1144_v14 }
  0xce   : > { %1482 = vmatmul.mubr.msk.bf16.vlgmr.msra.gmra.mrb[28].mxu1 %vm318_vm3, %v232_v15 }
  0xcf   : > { %1486 = vmatpush3.bf16.msra.mxu1 %v1155_v17  ;;  %1487 = vmatprep.mubr.msk.bf16.mxu1 %vm1622_vm0, %v1621_v3 }
  0xd1   : > { %1411 = vmatmul.mubr.msk.bf16.vlgmr.msra.gmra.mrb[28].mxu0 %vm318_vm3, %v232_v15  ;;  %v1836_v15 = vmul.u32.u64.low 3817748708, %v238_v59  ;;  %v1837_v16 = vmul.u32.u64.high 3817748708, %v238_v59, %v1836_v15 }
  0xd2   : > { %1158 = vmatpush1.bf16.msra.mxu0 %v1149_v18  ;;  %1189 = vmatprep.mubr.bf16.mxu0 %v1623_v6 }
  0xd6   : > { %1488 = vmatmul.mubr.msk.bf16.vlgmr.msra.gmra.mrb[32].mxu1 %vm318_vm3, %v233_v19 }
  0xd9   : > { %1414 = vmatmul.mubr.msk.bf16.vlgmr.msra.gmra.mrb[32].mxu0 %vm318_vm3, %v233_v19  ;;  %v1839_v18 = vmul.u32.u64.low 3817748708, %v239_v10  ;;  %v1840_v19 = vmul.u32.u64.high 3817748708, %v239_v10, %v1839_v18 }
 0x169   : > { %v407_v20 = vpop.f32.mrb[0].mxu1 }
 0x16a   : > { %v1441_v21 = vpop.f32.mrb[1].mxu1 }
 0x16b   : > { %v410_v22 = vpop.f32.mrb[2].mxu1 }
 0x16c   : > { %v366_v23 = vpop.f32.mrb[0].mxu0  ;;  %v1442_v24 = vpop.f32.mrb[3].mxu1 }
 0x16d   : > { %v368_v25 = vpop.f32.mrb[1].mxu0 }
 0x16e   : > { %v370_v3 = vpop.f32.mrb[2].mxu0 }
 0x16f   : > { %v371_v26 = vpop.f32.mrb[3].mxu0 }
 0x171   : > { %v500_v27 = vpop.f32.mrb[4].mxu1 }
 0x172   : > { %v501_v28 = vadd.f32 %v500_v27, %v407_v20  ;;  %v1447_v29 = vpop.f32.mrb[5].mxu1  ;;  %v269_v27 = vshrl.u32 %v1834_v13, 4 }
 0x173   : > { %v503_v6 = vpop.f32.mrb[6].mxu1  ;;  %v247_v29 = vshrl.u32 %v1837_v16, 4 }
 0x174   : > { %v459_v30 = vpop.f32.mrb[4].mxu0  ;;  %v1448_v31 = vpop.f32.mrb[7].mxu1 }
 0x175   : > { %v460_v32 = vadd.f32 %v459_v30, %v366_v23  ;;  %v461_v33 = vpop.f32.mrb[5].mxu0  ;;  %v258_v31 = vshrl.u32 %v1840_v19, 4 }
 0x176   : > { %v462_v34 = vadd.f32 %v461_v33, %v368_v25  ;;  %v463_v35 = vpop.f32.mrb[6].mxu0  ;;  %v270_v33 = vmul.u32 18, %v269_v27 }
 0x177   : > { %v464_v36 = vpop.f32.mrb[7].mxu0 }
 0x179   : > { %v602_v37 = vpop.f32.mrb[8].mxu1 }
 0x17a   : > { %v610_v38 = vadd.f32 %v602_v37, %v501_v28  ;;  %v1453_v39 = vpop.f32.mrb[9].mxu1 }
 0x17b   : > { %v605_v40 = vpop.f32.mrb[10].mxu1 }
 0x17c   : > { %v561_v41 = vpop.f32.mrb[8].mxu0  ;;  %v1454_v42 = vpop.f32.mrb[11].mxu1 }
 0x17d   : > { %v608_v43 = vadd.f32 %v561_v41, %v460_v32  ;;  %v563_v44 = vpop.f32.mrb[9].mxu0  ;;  %v259_v41 = vmul.u32 18, %v258_v31 }
 0x17e   : > { %v609_v45 = vadd.f32 %v563_v44, %v462_v34  ;;  %v565_v46 = vpop.f32.mrb[10].mxu0 }
 0x17f   : > { %v566_v47 = vpop.f32.mrb[11].mxu0 }
 0x181   : > { %v707_v48 = vpop.f32.mrb[12].mxu1 }
 0x182   : > { %v715_v49 = vadd.f32 %v707_v48, %v610_v38  ;;  %v1459_v50 = vpop.f32.mrb[13].mxu1  ;;  %v248_v38 = vmul.u32 18, %v247_v29  ;;  %v260_v48 = vsub.s32 %v239_v10, %v259_v41 }
 0x183   : > { %v710_v51 = vpop.f32.mrb[14].mxu1 }
 0x184   : > { %v666_v52 = vpop.f32.mrb[12].mxu0  ;;  %v1460_v53 = vpop.f32.mrb[15].mxu1  ;;  %vm275_vm15 = vcmp.ne.s32.totalorder %v260_v48, 0  ;;  %vm278_vm0 = vcmp.lt.s32.totalorder %v260_v48, 0 }
 0x185   : > { %v713_v54 = vadd.f32 %v666_v52, %v608_v43  ;;  %v668_v55 = vpop.f32.mrb[13].mxu0  ;;  %v271_v43 = vsub.s32 %v240_v1, %v270_v33  ;;  %vm1853_vm3 = vmand %vm278_vm0, %vm275_vm15 }
 0x186   : > { %v714_v56 = vadd.f32 %v668_v55, %v609_v45  ;;  %v670_v57 = vpop.f32.mrb[14].mxu0  ;;  %v249_v45 = vsub.s32 %v238_v59, %v248_v38 }
 0x187   : > { %v671_v58 = vpop.f32.mrb[15].mxu0  ;;  %vm276_vm11 = vcmp.ne.s32.totalorder %v271_v43, 0  ;;  %vm279_vm12 = vcmp.lt.s32.totalorder %v271_v43, 0 }
 0x188   : > { %vm274_vm13 = vcmp.ne.s32.totalorder %v249_v45, 0  ;;  %vm277_vm14 = vcmp.lt.s32.totalorder %v249_v45, 0  ;;  %vm1845_vm1 = vmand %vm279_vm12, %vm276_vm11  ;;  %v283_v59 = vadd.s32 18, %v249_v45 }
 0x189   : > { %v812_v60 = vpop.f32.mrb[16].mxu1  ;;  %vm1849_vm2 = vmand %vm277_vm14, %vm274_vm13 }
 0x18a   : > { %v820_v61 = vadd.f32 %v812_v60, %v715_v49  ;;  %v1465_v62 = vpop.f32.mrb[17].mxu1 }
 0x18b   : > { %v815_v63 = vpop.f32.mrb[18].mxu1 }
 0x18c   : > { %v771_v2 = vpop.f32.mrb[16].mxu0  ;;  %v1466_v4 = vpop.f32.mrb[19].mxu1 }
 0x18d   : > { %v818_v5 = vadd.f32 %v771_v2, %v713_v54  ;;  %v773_v7 = vpop.f32.mrb[17].mxu0  ;;  %v285_v54 = vadd.s32 18, %v271_v43  ;;  %v1244_v63 = vpop.permute.xlu0 %1243 }
 0x18e   : > { %v819_v8 = vadd.f32 %v773_v7, %v714_v56  ;;  %v775_v9 = vpop.f32.mrb[18].mxu0 }
 0x18f   : > { %v776_v11 = vpop.f32.mrb[19].mxu0  ;;  %v288_v2 = vsel %vm1845_vm1, %v285_v54, %v271_v43 }
 0x190   : > { %vm291_vm4 = vcmp.lt.s32.totalorder %v288_v2, 16 }
 0x191   : > { %v917_v14 = vpop.f32.mrb[20].mxu1 }
 0x192   : > { %v925_v0 = vadd.f32 %v917_v14, %v820_v61  ;;  %v1471_v17 = vpop.f32.mrb[21].mxu1  ;;  %v284_v61 = vadd.s32 18, %v260_v48 }
 0x193   : > { %v920_v20 = vpop.f32.mrb[22].mxu1 }
 0x194   : > { %v876_v21 = vpop.f32.mrb[20].mxu0  ;;  %v1472_v22 = vpop.f32.mrb[23].mxu1  ;;  %v287_v12 = vsel %vm1853_vm3, %v284_v61, %v260_v48 }
 0x195   : > { %v923_v23 = vadd.f32 %v876_v21, %v818_v5  ;;  %v878_v24 = vpop.f32.mrb[21].mxu0  ;;  %vm290_vm6 = vcmp.lt.s32.totalorder %v287_v12, 16 }
 0x196   : > { %v924_v25 = vadd.f32 %v878_v24, %v819_v8  ;;  %v880_v3 = vpop.f32.mrb[22].mxu0  ;;  %v286_v8 = vsel %vm1849_vm2, %v283_v59, %v249_v45 }
 0x197   : > { %v881_v26 = vpop.f32.mrb[23].mxu0  ;;  %vm289_vm5 = vcmp.lt.s32.totalorder %v286_v8, 16 }
 0x199   : > { %v1022_v28 = vpop.f32.mrb[24].mxu1 }
 0x19a   : > { %v1030_v6 = vadd.f32 %v1022_v28, %v925_v0  ;;  %v1477_v30 = vpop.f32.mrb[25].mxu1 }
 0x19b   : > { %v1025_v32 = vpop.f32.mrb[26].mxu1 }
 0x19c   : > { %v981_v34 = vpop.f32.mrb[24].mxu0  ;;  %v1478_v35 = vpop.f32.mrb[27].mxu1 }
 0x19d   : > { %v1028_v36 = vadd.f32 %v981_v34, %v923_v23  ;;  %v983_v37 = vpop.f32.mrb[25].mxu0 }
 0x19e   : > { %v1029_v39 = vadd.f32 %v983_v37, %v924_v25  ;;  %v985_v40 = vpop.f32.mrb[26].mxu0  ;;  %v235_v37 = vld [vmem:[%s1922_s3] sm:$0xff] }
 0x19f   : > { %v986_v42 = vpop.f32.mrb[27].mxu0  ;;  %v236_v40 = vld [vmem:[%s1923_s4] sm:$0xff] }
 0x1a1   : > { %v1127_v44 = vpop.f32.mrb[28].mxu1 }
 0x1a2   : > { %v1135_v46 = vadd.f32 %v1127_v44, %v1030_v6  ;;  %v1483_v47 = vpop.f32.mrb[29].mxu1 }
 0x1a3   : > { %v1130_v49 = vpop.f32.mrb[30].mxu1 }
 0x1a4   : > { %v1086_v50 = vpop.f32.mrb[28].mxu0  ;;  %v1484_v51 = vpop.f32.mrb[31].mxu1 }
 0x1a5   : > { %v1133_v52 = vadd.f32 %v1086_v50, %v1028_v36  ;;  %v1088_v53 = vpop.f32.mrb[29].mxu0 }
 0x1a6   : > { %v1134_v55 = vadd.f32 %v1088_v53, %v1029_v39  ;;  %v1090_v56 = vpop.f32.mrb[30].mxu0 }
 0x1a7   : > { %v1091_v58 = vpop.f32.mrb[31].mxu0 }
 0x1a9   : > { %v1232_v62 = vpop.f32.mrb[32].mxu1 }
 0x1aa   : > { %v1240_v4 = vadd.f32 %v1232_v62, %v1135_v46  ;;  %v1489_v5 = vpop.f32.mrb[33].mxu1 }
 0x1ab   : > { %v1235_v7 = vpop.f32.mrb[34].mxu1 }
 0x1ac   : > { %v1248_v9 = vadd.f32 %v1244_v63, %v1240_v4  ;;  %v1191_v10 = vpop.f32.mrb[32].mxu0  ;;  %v1490_v11 = vpop.f32.mrb[35].mxu1 }
 0x1ad   : > { %v1238_v13 = vadd.f32 %v1191_v10, %v1133_v52  ;;  %v1193_v14 = vpop.f32.mrb[33].mxu0 }
 0x1ae   : > { %v1239_v15 = vadd.f32 %v1193_v14, %v1134_v55  ;;  %v1195_v16 = vpop.f32.mrb[34].mxu0  ;;  %v1257_v18 = vsel %vm291_vm4, %v1248_v9, 0.0 }
 0x1af   : > { %v1246_v0 = vadd.f32 %v1244_v63, %v1238_v13  ;;  %v1196_v17 = vpop.f32.mrb[35].mxu0  ;;  %v1266_v23 = vmul.f32 %v1257_v18, %v1257_v18  ;;  %v1260_v3 = vsel %vm1259_vm7, %v1257_v18, 0.0 }
 0x1b0   : > { %v1247_v19 = vadd.f32 %v1244_v63, %v1239_v15 }
 0x1b1   : > { %v1255_v20 = vsel %vm289_vm5, %v1246_v0, 0.0  ;;  %v1268_v28 = vsel %vm1259_vm7, %v1266_v23, 0.0 }
 0x1b2   : > { %v1256_v21 = vsel %vm290_vm6, %v1247_v19, 0.0  ;;  %v1264_v22 = vmul.f32 %v1255_v20, %v1255_v20 }
 0x1b3   : > { %v1258_v24 = vadd.f32 %v1256_v21, %v1255_v20  ;;  %v1265_v25 = vmul.f32 %v1256_v21, %v1256_v21 }
 0x1b5   : > { %v1261_v26 = vadd.f32 %v1260_v3, %v1258_v24  ;;  %v1267_v27 = vadd.f32 %v1265_v25, %v1264_v22 }
 0x1b7   : > { %1262 = vadd.xlane.f32.xlu1 %v1261_v26  ;;  %v1269_v29 = vadd.f32 %v1268_v28, %v1267_v27 }
 0x1b9   : > { %1270 = vadd.xlane.f32.xlu0 %v1269_v29 }
 0x244   : > { %v1263_v6 = vpop.xlane.xlu1 %1262 }
 0x245   : > { %v1272_v30 = vmul.f32 0.00390625, %v1263_v6 }
 0x246   : > { %v1271_v31 = vpop.xlane.xlu0 %1270 }
 0x247   : > { %v1274_v32 = vmul.f32 %v1272_v30, %v1272_v30  ;;  %v1273_v33 = vmul.f32 0.00390625, %v1271_v31 }
 0x249   : > { %v1275_v34 = vsub.f32 %v1273_v33, %v1274_v32 }
 0x24b   : > { %v1276_v35 = vmax.f32 %v1275_v34, 0.0 }
 0x24d   : > { %v1277_v36 = vadd.f32 1e-05, %v1276_v35 }
 0x24f   : > { %1554 = vrsqrt.f32 %v1277_v36 }
 0x259   : > { %v1555_v38 = vpop.eup %1554 }
 0x25a   : > { %v1279_v39 = vmul.f32 %v1555_v38, %v235_v37 }
 0x25c   : > { %1284 = vperm.xlu1 %1552, %v1279_v39   ;;  %v1280_v41 = vmul.f32 %v1279_v39, %v1272_v30 }
 0x25e   : > { %v1281_v42 = vsub.f32 %v236_v40, %v1280_v41 }
 0x260   : > { %1292 = vperm.xlu0 %1551, %v1281_v42  }
 0x2db   : > { %v1285_v43 = vpop.permute.xlu1 %1284 }
 0x2dc   : > { %v1287_v44 = vmul.f32 %v1285_v43, %v1246_v0  ;;  %v1288_v45 = vmul.f32 %v1285_v43, %v1247_v19  ;;  %v1289_v46 = vmul.f32 %v1285_v43, %v1248_v9 }
 0x2df   : > { %v1293_v47 = vpop.permute.xlu0 %1292 }
 0x2e0   : > { %v1295_v48 = vadd.f32 %v1293_v47, %v1287_v44  ;;  %v1296_v49 = vadd.f32 %v1293_v47, %v1288_v45  ;;  %v1297_v50 = vadd.f32 %v1293_v47, %v1289_v46 }
 0x2e2   : > { %vm1298_vm8 = vcmp.ge.f32.partialorder %v1295_v48, 0.0  ;;  %vm1299_vm9 = vcmp.ge.f32.partialorder %v1296_v49, 0.0  ;;  %vm1300_vm10 = vcmp.ge.f32.partialorder %v1297_v50, 0.0  ;;  %v1301_v51 = vmul.f32 0.01, %v1295_v48 }
 0x2e3   : > { %v1302_v52 = vmul.f32 0.01, %v1296_v49  ;;  %v1303_v53 = vmul.f32 0.01, %v1297_v50 }
 0x2e4   : > { %v1304_v54 = vsel %vm1298_vm8, %v1295_v48, %v1301_v51 }
 0x2e5   : > { %v1305_v55 = vsel %vm1299_vm9, %v1296_v49, %v1302_v52  ;;  %v1306_v56 = vsel %vm1300_vm10, %v1297_v50, %v1303_v53  ;;  %1307 = vst [vmem:[%s217_s13] sm:$0xff] %v1304_v54 }
 0x2e6   : > { %1308 = vst [vmem:[%s217_s13 + $0x8] sm:$0xff] %v1305_v55  ;;  %1309 = vst.msk [vmem:[%s217_s13 + $0x10] sm:$0xff] %vm1259_vm7, %v1306_v56 }
 0x2e7   : > { %1569 = shalt.err (!%p1566_p3)
}
 0x2e8   : > { %s1570_s6 = scalar_lea.hbm %s1876_s17, 384  ;;  %s1574_s9 = scalar_lea.hbm %s1924_s5, 768 }
 0x2e9   : > { %p1571_p4 = scmp.ne.s32.totalorder %s1876_s17, %s1570_s6  ;;  %p1575_p9 = scmp.lt.u32.totalorder %s1876_s17, %s1924_s5 }
 0x2ea   : > { %p1576_p10 = scmp.lt.u32.totalorder %s1574_s9, %s1570_s6  ;;  %p1578_p12 = scmp.lt.u32.totalorder %s1570_s6, %s1876_s17 }
 0x2eb   : > { %p1572_p7 = pnand %p1571_p4, %p1701_p5 }
 0x2ec   : > { %p1577_p11 = por %p1576_p10, %p1575_p9 }
 0x2ed   : > { %p1573_p8 = pneg %p1572_p7 }
 0x2ee   : > { %p1579_p13 = por %p1578_p12, %p1577_p11 }
 0x2f0   : > { %p1580_p0 = pnand %p1579_p13, %p1573_p8 }
 0x2f2   : > { %1583 = shalt.err (!%p1580_p0)
}
 0x2f3   : > { %1500 = dma.vmem_to_hbm [thread:$0]  (%p1701_p5), %s1878_s14, 384, %s1876_s17, %s1311_s22  }
 0x2f4 PF: > { %p1506_p1 = scmp.ge.s32.totalorder %s1618_s21, 2  ;;  %s1337_s12 = sand.u32 1, %s1606_s18  }
 0x2f5   : > { %s1338_s13 = scalar_lea.sflag [#allocation3], %s1337_s12 }
 0x2f6   : > { %p1503_p2 = pnand %p1506_p1, %p1705_p6 }
 0x2f8   : > { %1601 = dma.done.wait (!%p1503_p2), %s1338_s13, 384  }
 0x2f9   : > { %1603 = vsyncadd (!%p1503_p2), %s1338_s13, 4294966912  ;;  %p15_p3 = scmp.ge.s32.totalorder %s1688_s24, 4   ;;  %s1933_s18 = smov %s1610_s19 }
 0x2fa   : > { %s1934_s19 = smov %s1614_s20  ;;  %s1935_s20 = smov %s1699_s27 }
 0x2fb   : > { %s1936_s21 = smov %s1688_s24  ;;  %17 = sbr.rel (!%p15_p3) target bundleno = 3 (0x3), region = 75 }
 0x302   :  { %1343 = vsyncpa [#allocation3], 1 }
 0x303   :  { %1345 = vsyncpa [#allocation3 + $0x1], 1 }

</bundles_post_ra>
